<compile_context>
chip_gen: v7x
topology: tpu7x:2x2x1
jax: 0.10.0
libtpu: 0.0.40
codegen_flags: <defaults>
</compile_context>

<pallas_src>
import jax
import jax.numpy as jnp
from jax.experimental import pallas as pl
from jax.experimental.pallas import tpu as pltpu


def _round_up(x, m):
    return ((x + m - 1) // m) * m


def supervised_kernel(x_ref, w_ref, b_ref, out_ref, acc_ref):
    # x_ref:   [tm, tk]  f32   (batch tile x reduction tile; cast to bf16 in-kernel)
    # w_ref:   [tk, Kp]  bf16
    # b_ref:   [1,  Kp]  f32   (padded class columns pre-masked to -1e30)
    # out_ref: [tm, Kp]  f32   softmax probabilities
    # acc_ref: [tm, Kp]  f32   scratch accumulator, resident across the k axis
    kstep = pl.program_id(1)

    @pl.when(kstep == 0)
    def _():
        acc_ref[...] = jnp.zeros_like(acc_ref)
        out_ref[...] = jnp.zeros_like(out_ref)   # never leave the out block uninitialized

    # MXU matmul: bf16 operands, f32 accumulation.
    acc_ref[...] += jnp.dot(x_ref[...].astype(jnp.bfloat16), w_ref[...],
                            preferred_element_type=jnp.float32)

    @pl.when(kstep == pl.num_programs(1) - 1)
    def _():
        # Padded class columns already carry a -1e30 bias (their acc is exactly 0),
        # so no in-kernel mask is needed.
        logits = acc_ref[...] + b_ref[...]
        m = jnp.max(logits, axis=1, keepdims=True)
        e = jnp.exp(logits - m)
        s = jnp.sum(e, axis=1, keepdims=True)
        out_ref[...] = (e / s).astype(out_ref.dtype)   # exact normalization


def supervised_forward(images, w, b, *, tm=128, tk=2048):
    """images: [B, C, H, W]; w: [D, K]; b: [K].
    Returns {'out': [B, K]} = softmax(flatten(images) @ w + b, axis=1)."""
    B = images.shape[0]
    x2d = images.reshape(B, -1).astype(jnp.float32)   # flatten NCHW; stays f32 in HBM
    D = x2d.shape[1]
    K = w.shape[1]

    LANE = 128
    SUB = 16                       # bf16 sublane packing for batch tiling/padding

    Kp = _round_up(K, LANE)        # lane-dense class axis (keep 128-wide; HBM-bound)

    # Reduction tiling: single k-step (W resident, fetched once for the whole grid)
    # whenever it comfortably fits in VMEM; otherwise tile the D axis.
    Dp_lane = _round_up(D, LANE)
    if Dp_lane <= 4096:
        tk = Dp_lane
    else:
        tk = min(tk, Dp_lane)
    Dp = _round_up(D, tk)
    nk = Dp // tk

    # Batch tiling: multiple of 16; ensure >= 2 batch tiles when possible so the
    # "parallel" axis can be sharded across v7x's two TensorCores.
    tm = min(tm, _round_up(B, SUB))
    if B > SUB and _round_up(B, tm) // tm == 1:
        tm = _round_up(pl.cdiv(B, 2), SUB)
    Bp = _round_up(B, tm)
    nb = Bp // tm

    # Pad only when needed (no bf16 materialization of x; cast happens in-kernel).
    # TODO(synk): for very large unaligned B/D a masked edge tile would avoid this copy.
    x_in = x2d if (Bp, Dp) == (B, D) else (
        jnp.zeros((Bp, Dp), jnp.float32).at[:B, :D].set(x2d))
    w_bf = w.astype(jnp.bfloat16)
    w_in = w_bf if (Dp, Kp) == (D, K) else (
        jnp.zeros((Dp, Kp), jnp.bfloat16).at[:D, :K].set(w_bf))
    # Fold the class-padding mask into the bias: padded class columns get a large
    # negative value, so exp() zeroes them out in the softmax.
    b_in = jnp.full((1, Kp), -1e30, jnp.float32).at[0, :K].set(b.astype(jnp.float32))

    cost = pl.CostEstimate(
        flops=2 * Bp * Dp * Kp,
        transcendentals=Bp * Kp,
        bytes_accessed=x_in.size * 4 + w_in.size * 2 + b_in.size * 4 + Bp * Kp * 4,
    )

    out_p = pl.pallas_call(
        supervised_kernel,
        out_shape=jax.ShapeDtypeStruct((Bp, Kp), jnp.float32),
        grid_spec=pltpu.PrefetchScalarGridSpec(
            num_scalar_prefetch=0,
            grid=(nb, nk),                                    # (batch tiles, reduction tiles)
            in_specs=[
                pl.BlockSpec((tm, tk), lambda i, k: (i, k)),  # x tile (f32)
                pl.BlockSpec((tk, Kp), lambda i, k: (k, 0)),  # W tile (resident when nk == 1)
                pl.BlockSpec((1, Kp), lambda i, k: (0, 0)),   # bias (resident)
            ],
            out_specs=pl.BlockSpec((tm, Kp), lambda i, k: (i, 0)),
            scratch_shapes=[pltpu.VMEM((tm, Kp), jnp.float32)],
        ),
        compiler_params=pltpu.CompilerParams(
            dimension_semantics=("parallel", "arbitrary"),
            vmem_limit_bytes=32 * 1024 * 1024,
        ),
        cost_estimate=cost,
    )(x_in, w_in, b_in)

    return {"out": out_p[:B, :K]}


if __name__ == "__main__":
    key = jax.random.PRNGKey(0)
    k_img, k_w, k_b = jax.random.split(key, 3)

    # Small shapes consistent with the module: batch=2, channels=4, spatial=16x16,
    # 10 output classes (as in Evaluator(10)).
    B, C, H, Wd = 2, 4, 16, 16
    K = 10
    D = C * H * Wd

    images = jax.random.normal(k_img, (B, C, H, Wd), dtype=jnp.float32)
    w = jax.random.normal(k_w, (D, K), dtype=jnp.float32) * 0.02
    b = jax.random.normal(k_b, (K,), dtype=jnp.float32) * 0.01

    outs = supervised_forward(images, w, b)
    probs = jax.block_until_ready(outs["out"])

    # sanity: shape [B, K], rows sum to 1 (softmax over dim=1, exact normalization)
    assert probs.shape == (B, K)
    assert jnp.allclose(jnp.sum(probs, axis=1), 1.0, atol=1e-4)

    # cross-check against a reference using the same bf16-operand / f32-accum path
    x_bf = images.reshape(B, -1).astype(jnp.bfloat16)
    ref_logits = jnp.dot(x_bf, w.astype(jnp.bfloat16),
                         preferred_element_type=jnp.float32) + b
    ref = jax.nn.softmax(ref_logits, axis=1)
    assert jnp.allclose(probs, ref, atol=2e-3)

    print("KERNEL_OK")
</pallas_src>

<mosaic_0001>
module attributes {stable_mosaic.version = 11 : i64} {
  func.func @supervised_kernel(%arg0: i32, %arg1: i32, %arg2: memref<16x1024xf32, #tpu.memory_space<vmem>>, %arg3: memref<1024x128xbf16, #tpu.memory_space<vmem>>, %arg4: memref<1x128xf32, #tpu.memory_space<vmem>>, %arg5: memref<16x128xf32, #tpu.memory_space<vmem>>, %arg6: memref<16x128xf32, #tpu.memory_space<vmem>>) attributes {dimension_semantics = [#tpu.dimension_semantics<parallel>, #tpu.dimension_semantics<arbitrary>], iteration_bounds = array<i64: 1, 1>, scalar_prefetch = 0 : i64, scratch_operands = 1 : i64, tpu.core_type = #tpu.core_type<tc>, window_params = [{transform_indices = @transform_0, window_bounds = array<i64: 16, 1024>}, {transform_indices = @transform_1, window_bounds = array<i64: 1024, 128>}, {pipeline_mode = #tpu.pipeline_mode<synchronous>, transform_indices = @transform_2, window_bounds = array<i64: 1, 128>}, {transform_indices = @transform_3, window_bounds = array<i64: 16, 128>}]} {
    %c0_i32 = arith.constant 0 : i32
    %0 = arith.cmpi eq, %arg1, %c0_i32 : i32
    %1 = arith.extui %0 : i1 to i32
    %c0_i32_0 = arith.constant 0 : i32
    %2 = arith.cmpi ne, %1, %c0_i32_0 : i32
    scf.if %2 {
      %cst_10 = arith.constant 0.000000e+00 : f32
      %13 = vector.broadcast %cst_10 : f32 to vector<16x128xf32>
      %c0_11 = arith.constant 0 : index
      %c0_12 = arith.constant 0 : index
      %14 = vector.load %arg6[%c0_11, %c0_12] : memref<16x128xf32, #tpu.memory_space<vmem>>, vector<16x128xf32>
      tpu.vector_store %arg6[%c0_11, %c0_12], %13 {strides = array<i32>} : memref<16x128xf32, #tpu.memory_space<vmem>>, vector<16x128xf32>,
      %cst_13 = arith.constant 0.000000e+00 : f32
      %15 = vector.broadcast %cst_13 : f32 to vector<16x128xf32>
      %c0_14 = arith.constant 0 : index
      %c0_15 = arith.constant 0 : index
      %16 = vector.load %arg5[%c0_14, %c0_15] : memref<16x128xf32, #tpu.memory_space<vmem>>, vector<16x128xf32>
      tpu.vector_store %arg5[%c0_14, %c0_15], %15 {strides = array<i32>} : memref<16x128xf32, #tpu.memory_space<vmem>>, vector<16x128xf32>,
    } else {
    }
    %c0 = arith.constant 0 : index
    %c0_1 = arith.constant 0 : index
    %3 = vector.load %arg6[%c0, %c0_1] : memref<16x128xf32, #tpu.memory_space<vmem>>, vector<16x128xf32>
    %c0_2 = arith.constant 0 : index
    %c0_3 = arith.constant 0 : index
    %4 = vector.load %arg2[%c0_2, %c0_3] : memref<16x1024xf32, #tpu.memory_space<vmem>>, vector<16x1024xf32>
    %5 = arith.truncf %4 : vector<16x1024xf32> to vector<16x1024xbf16>
    %c0_4 = arith.constant 0 : index
    %c0_5 = arith.constant 0 : index
    %6 = vector.load %arg3[%c0_4, %c0_5] : memref<1024x128xbf16, #tpu.memory_space<vmem>>, vector<1024x128xbf16>
    %cst = arith.constant dense<0.000000e+00> : vector<16x128xf32>
    %7 = tpu.matmul %5, %6, %cst {dimension_numbers = #tpu.dot_dimension_numbers<[1], [0], [0], [1], [0, 0, 1, 1], [], []>} : vector<16x1024xbf16>, vector<1024x128xbf16>, vector<16x128xf32> -> vector<16x128xf32>
    %8 = arith.addf %3, %7 : vector<16x128xf32>
    %c0_6 = arith.constant 0 : index
    %c0_7 = arith.constant 0 : index
    %9 = vector.load %arg6[%c0_6, %c0_7] : memref<16x128xf32, #tpu.memory_space<vmem>>, vector<16x128xf32>
    tpu.vector_store %arg6[%c0_6, %c0_7], %8 {strides = array<i32>} : memref<16x128xf32, #tpu.memory_space<vmem>>, vector<16x128xf32>,
    %c0_i32_8 = arith.constant 0 : i32
    %10 = arith.cmpi eq, %arg1, %c0_i32_8 : i32
    %11 = arith.extui %10 : i1 to i32
    %c0_i32_9 = arith.constant 0 : i32
    %12 = arith.cmpi ne, %11, %c0_i32_9 : i32
    scf.if %12 {
      %c0_10 = arith.constant 0 : index
      %c0_11 = arith.constant 0 : index
      %13 = vector.load %arg6[%c0_10, %c0_11] : memref<16x128xf32, #tpu.memory_space<vmem>>, vector<16x128xf32>
      %c0_12 = arith.constant 0 : index
      %c0_13 = arith.constant 0 : index
      %14 = vector.load %arg4[%c0_12, %c0_13] : memref<1x128xf32, #tpu.memory_space<vmem>>, vector<1x128xf32>
      %15 = vector.broadcast %14 : vector<1x128xf32> to vector<16x128xf32>
      %16 = arith.addf %13, %15 : vector<16x128xf32>
      %cst_14 = arith.constant dense<0xFF800000> : vector<16xf32>
      %17 = vector.multi_reduction <maximumf>, %16, %cst_14 [1] : vector<16x128xf32> to vector<16xf32>
      %18 = vector.shape_cast %17 : vector<16xf32> to vector<16x1xf32>
      %19 = vector.broadcast %18 : vector<16x1xf32> to vector<16x128xf32>
      %20 = arith.subf %16, %19 : vector<16x128xf32>
      %21 = math.exp %20 : vector<16x128xf32>
      %cst_15 = arith.constant dense<0.000000e+00> : vector<16xf32>
      %22 = vector.multi_reduction <add>, %21, %cst_15 [1] : vector<16x128xf32> to vector<16xf32>
      %23 = vector.shape_cast %22 : vector<16xf32> to vector<16x1xf32>
      %24 = vector.broadcast %23 : vector<16x1xf32> to vector<16x128xf32>
      %25 = arith.divf %21, %24 : vector<16x128xf32>
      %c0_16 = arith.constant 0 : index
      %c0_17 = arith.constant 0 : index
      %26 = vector.load %arg5[%c0_16, %c0_17] : memref<16x128xf32, #tpu.memory_space<vmem>>, vector<16x128xf32>
      tpu.vector_store %arg5[%c0_16, %c0_17], %25 {strides = array<i32>} : memref<16x128xf32, #tpu.memory_space<vmem>>, vector<16x128xf32>,
    } else {
    }
    return
  }
  func.func @transform_0(%arg0: i32, %arg1: i32) -> (i32, i32) {
    %c0_i32 = arith.constant 0 : i32
    return %arg0, %arg1 : i32, i32
  }
  func.func @transform_1(%arg0: i32, %arg1: i32) -> (i32, i32) {
    %c0_i32 = arith.constant 0 : i32
    %c0_i32_0 = arith.constant 0 : i32
    return %arg1, %c0_i32 : i32, i32
  }
  func.func @transform_2(%arg0: i32, %arg1: i32) -> (i32, i32) {
    %c0_i32 = arith.constant 0 : i32
    %c0_i32_0 = arith.constant 0 : i32
    %c0_i32_1 = arith.constant 0 : i32
    return %c0_i32, %c0_i32_0 : i32, i32
  }
  func.func @transform_3(%arg0: i32, %arg1: i32) -> (i32, i32) {
    %c0_i32 = arith.constant 0 : i32
    %c0_i32_0 = arith.constant 0 : i32
    return %arg0, %c0_i32 : i32, i32
  }
}

</mosaic_0001>

<bundles_post_ra>
// kernel: tpu_custom_call.1
= control target key start
LH: loop header
LB: loop body
LE: loop exit
PB: predicated region body
PF: predicated region fallthrough
CT: control target
= control target key end

     0   :  { %8 = vsyncpa [#allocation4], 0  ;;  %s1183_s0 = inlined_call_operand.hbm [shape: f32[16,1024], index: 0, kind: input, shape index: {}]   ;;  %s1184_s1 = inlined_call_operand.hbm [shape: bf16[1024,128], index: 1, kind: input, shape index: {}]   ;;  %s1185_s2 = inlined_call_operand.vmem [shape: f32[1,128], index: 2, kind: input, shape index: {}]   ;;  %s1186_s3 = inlined_call_operand.hbm [shape: f32[16,128], index: 3, kind: output, shape index: {}]  }
   0x1   :  { %9 = vsyncpa [#allocation7], 0 }
   0x2   :  { %10 = vsyncpa [#allocation5], 0  ;;  %s1116_s12 = smov [#allocation3]   ;;  %s1044_s16 = scalar_lea.hbm %s1183_s0, 2048 }
   0x3   :  { %s16_s13 = sshll.u32 %s1116_s12, 4  ;;  %p1045_p0 = scmp.ne.s32.totalorder %s1183_s0, %s1044_s16  ;;  %s17_s13 = int_to_ptr.vmem [resolvable:$true] %s16_s13 }
   0x4   :  { %p1048_p1 = scmp.lt.u32.totalorder %s1044_s16, %s1183_s0 }
   0x6   :  { %p1050_p2 = pnand %p1048_p1, %p1045_p0 }
   0x8   :  { %1053 = shalt.err (!%p1050_p2)
}
   0x9   :  { %s1054_s21 = scalar_lea.vmem %s17_s13, 2048  ;;  %p1059_p4 = scmp.lt.s32.totalorder %s17_s13, %s17_s13 }
   0xa   :  { %p1055_p3 = scmp.ne.s32.totalorder %s17_s13, %s1054_s21  ;;  %p1060_p5 = scmp.lt.s32.totalorder %s1054_s21, %s1054_s21 }
   0xc   :  { %p1061_p6 = por %p1060_p5, %p1059_p4 }
   0xe   :  { %p1062_p7 = pnand %p1061_p6, %p1055_p3 }
  0x10   :  { %1065 = shalt.err (!%p1062_p7)
}
  0x11   :  { %s1117_s22 = smov 1024   ;;  %s1118_s23 = smov 64  }
  0x12   :  { %22 = dma.hbm_to_vmem [thread:$0]  %s1183_s0, 2048, %s17_s13, [#allocation4], %s1117_s22, %s1117_s22, %s1118_s23  }
  0x13   :  { %s1119_s26 = smov [#allocation6]   ;;  %s1066_s30 = scalar_lea.hbm %s1184_s1, 8192 }
  0x14   :  { %s28_s27 = sshll.u32 %s1119_s26, 4  ;;  %p1067_p8 = scmp.ne.s32.totalorder %s1184_s1, %s1066_s30  ;;  %s29_s27 = int_to_ptr.vmem [resolvable:$true] %s28_s27 }
  0x15   :  { %p1070_p9 = scmp.lt.u32.totalorder %s1066_s30, %s1184_s1 }
  0x17   :  { %p1072_p10 = pnand %p1070_p9, %p1067_p8 }
  0x19   :  { %1075 = shalt.err (!%p1072_p10)
}
  0x1a   :  { %s1076_s8 = scalar_lea.vmem %s29_s27, 8192  ;;  %p1081_p12 = scmp.lt.s32.totalorder %s29_s27, %s29_s27 }
  0x1b   :  { %p1077_p11 = scmp.ne.s32.totalorder %s29_s27, %s1076_s8  ;;  %p1082_p13 = scmp.lt.s32.totalorder %s1076_s8, %s1076_s8 }
  0x1d   :  { %p1083_p0 = por %p1082_p13, %p1081_p12 }
  0x1f   :  { %p1084_p1 = pnand %p1083_p0, %p1077_p11 }
  0x21   :  { %1087 = shalt.err (!%p1084_p1)
}
  0x22   :  { %s1120_s0 = smov 4  }
  0x23   :  { %34 = dma.hbm_to_vmem [thread:$0]  %s1184_s1, 8192, %s29_s27, [#allocation7], %s1118_s23, %s1118_s23, %s1120_s0  }
  0x24   :  { %1110 = dma.done.wait [#allocation4], 2048  }
  0x25   :  { %1111 = vsyncadd [#allocation4], 4294965248 }
  0x26   :  { %1112 = dma.done.wait [#allocation7], 8192  }
  0x27   :  { %1113 = vsyncadd [#allocation7], 4294959104  ;;  %v972_v0 = vld [vmem:[#allocation6 + $0x40] sm:$0xff]   ;;  %v976_v4 = vld [vmem:[#allocation6 + $0x48] sm:$0xff]  }
  0x28   :  { %v973_v1 = vld [vmem:[#allocation6 + $0xc0] sm:$0xff]   ;;  %875 = vmatprep.subr.bf16.mxu0 %v972_v0  ;;  %v977_v5 = vld [vmem:[#allocation6 + $0xc8] sm:$0xff]   ;;  %v980_v8 = vld [vmem:[#allocation6 + $0x50] sm:$0xff]  }
  0x29   :  { %v974_v2 = vld [vmem:[#allocation6] sm:$0xff]   ;;  %897 = vmatprep.subr.bf16.mxu1 %v973_v1  ;;  %v978_v6 = vld [vmem:[#allocation6 + $0x8] sm:$0xff]   ;;  %v981_v9 = vld [vmem:[#allocation6 + $0xd0] sm:$0xff]  }
  0x2a   :  { %v975_v3 = vld [vmem:[#allocation6 + $0x80] sm:$0xff]   ;;  %876 = vmatpush3.bf16.msra.mxu0 %v974_v2  ;;  %v979_v7 = vld [vmem:[#allocation6 + $0x88] sm:$0xff]   ;;  %v982_v10 = vld [vmem:[#allocation6 + $0x10] sm:$0xff]  }
  0x2b   :  { %898 = vmatpush3.bf16.msra.mxu1 %v975_v3  ;;  %877 = vmatprep.subr.bf16.mxu0 %v976_v4  ;;  %v983_v11 = vld [vmem:[#allocation6 + $0x90] sm:$0xff]   ;;  %v984_v12 = vld [vmem:[#allocation6 + $0x58] sm:$0xff]   ;;  %v988_v16 = vld [vmem:[#allocation6 + $0x60] sm:$0xff]  }
  0x2c   :  { %899 = vmatprep.subr.bf16.mxu1 %v977_v5  ;;  %v985_v13 = vld [vmem:[#allocation6 + $0xd8] sm:$0xff]   ;;  %v989_v17 = vld [vmem:[#allocation6 + $0xe0] sm:$0xff]   ;;  %v992_v20 = vld [vmem:[#allocation6 + $0x68] sm:$0xff]  }
  0x2d   :  { %v986_v14 = vld [vmem:[#allocation6 + $0x18] sm:$0xff]   ;;  %v990_v18 = vld [vmem:[#allocation6 + $0x20] sm:$0xff]   ;;  %v993_v21 = vld [vmem:[#allocation6 + $0xe8] sm:$0xff]  }
  0x2e   :  { %878 = vmatpush3.bf16.msra.mxu0 %v978_v6  ;;  %v987_v15 = vld [vmem:[#allocation6 + $0x98] sm:$0xff]   ;;  %v991_v19 = vld [vmem:[#allocation6 + $0xa0] sm:$0xff]   ;;  %v994_v22 = vld [vmem:[#allocation6 + $0x28] sm:$0xff]  }
  0x2f   :  { %900 = vmatpush3.bf16.msra.mxu1 %v979_v7  ;;  %879 = vmatprep.subr.bf16.mxu0 %v980_v8  ;;  %v995_v23 = vld [vmem:[#allocation6 + $0xa8] sm:$0xff]   ;;  %v996_v24 = vld [vmem:[#allocation6 + $0x70] sm:$0xff]   ;;  %v1000_v28 = vld [vmem:[#allocation6 + $0x78] sm:$0xff]  }
  0x30   :  { %901 = vmatprep.subr.bf16.mxu1 %v981_v9  ;;  %v997_v25 = vld [vmem:[#allocation6 + $0xf0] sm:$0xff]   ;;  %v1001_v29 = vld [vmem:[#allocation6 + $0xf8] sm:$0xff]   ;;  %v55_v32 = vld [vmem:[#allocation3 + $0x8] sm:$0xff] }
  0x31   :  { %v998_v26 = vld [vmem:[#allocation6 + $0x30] sm:$0xff]   ;;  %v1002_v30 = vld [vmem:[#allocation6 + $0x38] sm:$0xff]   ;;  %v63_v33 = vld [vmem:[#allocation3 + $0x48] sm:$0xff] }
  0x32   :  { %880 = vmatpush3.bf16.msra.mxu0 %v982_v10  ;;  %v999_v27 = vld [vmem:[#allocation6 + $0xb0] sm:$0xff]   ;;  %v1003_v31 = vld [vmem:[#allocation6 + $0xb8] sm:$0xff]   ;;  %v71_v35 = vpack.c.bf16 %v63_v33, %v55_v32  ;;  %v54_v37 = vld [vmem:[#allocation3] sm:$0xff] }
  0x33   :  { %902 = vmatpush3.bf16.msra.mxu1 %v983_v11  ;;  %881 = vmatprep.subr.bf16.mxu0 %v984_v12  ;;  %v57_v34 = vld [vmem:[#allocation3 + $0x18] sm:$0xff]  ;;  %v62_v38 = vld [vmem:[#allocation3 + $0x40] sm:$0xff]  ;;  %v56_v41 = vld [vmem:[#allocation3 + $0x10] sm:$0xff] }
  0x34   :  { %903 = vmatprep.subr.bf16.mxu1 %v985_v13  ;;  %v65_v36 = vld [vmem:[#allocation3 + $0x58] sm:$0xff]  ;;  %v70_v40 = vpack.c.bf16 %v62_v38, %v54_v37  ;;  %v64_v42 = vld [vmem:[#allocation3 + $0x50] sm:$0xff]  ;;  %622 = vmatprep.mubr.bf16.mxu0 %v71_v35  ;;  %v1004_v44 = vld [vmem:[#allocation6 + $0x140] sm:$0xff]  }
  0x35   :  { %v73_v39 = vpack.c.bf16 %v65_v36, %v57_v34  ;;  %v72_v43 = vpack.c.bf16 %v64_v42, %v56_v41  ;;  %v1005_v45 = vld [vmem:[#allocation6 + $0x1c0] sm:$0xff]   ;;  %v1008_v48 = vld [vmem:[#allocation6 + $0x148] sm:$0xff]   ;;  %v1012_v52 = vld [vmem:[#allocation6 + $0x150] sm:$0xff]  }
  0x36   :  { %882 = vmatpush3.bf16.msra.mxu0 %v986_v14  ;;  %v1006_v46 = vld [vmem:[#allocation6 + $0x100] sm:$0xff]   ;;  %v1009_v49 = vld [vmem:[#allocation6 + $0x1c8] sm:$0xff]   ;;  %v1013_v53 = vld [vmem:[#allocation6 + $0x1d0] sm:$0xff]  }
  0x37   :  { %904 = vmatpush3.bf16.msra.mxu1 %v987_v15  ;;  %883 = vmatprep.subr.bf16.mxu0 %v988_v16  ;;  %v1007_v47 = vld [vmem:[#allocation6 + $0x180] sm:$0xff]   ;;  %v1010_v50 = vld [vmem:[#allocation6 + $0x108] sm:$0xff]   ;;  %v1014_v54 = vld [vmem:[#allocation6 + $0x110] sm:$0xff]  }
  0x38   :  { %905 = vmatprep.subr.bf16.mxu1 %v989_v17  ;;  %663 = vmatprep.mubr.bf16.mxu1 %v73_v39  ;;  %v1011_v51 = vld [vmem:[#allocation6 + $0x188] sm:$0xff]   ;;  %v1015_v55 = vld [vmem:[#allocation6 + $0x190] sm:$0xff]   ;;  %v1016_v56 = vld [vmem:[#allocation6 + $0x158] sm:$0xff]  }
  0x39   :  { %v1017_v57 = vld [vmem:[#allocation6 + $0x1d8] sm:$0xff]   ;;  %v1020_v60 = vld [vmem:[#allocation6 + $0x160] sm:$0xff]   ;;  %v1024_v0 = vld [vmem:[#allocation6 + $0x168] sm:$0xff]  }
  0x3a   :  { %884 = vmatpush3.bf16.msra.mxu0 %v990_v18  ;;  %v1018_v58 = vld [vmem:[#allocation6 + $0x118] sm:$0xff]   ;;  %v1021_v61 = vld [vmem:[#allocation6 + $0x1e0] sm:$0xff]   ;;  %v1025_v1 = vld [vmem:[#allocation6 + $0x1e8] sm:$0xff]  }
  0x3b   :  { %906 = vmatpush3.bf16.msra.mxu1 %v991_v19  ;;  %885 = vmatprep.subr.bf16.mxu0 %v992_v20  ;;  %v1019_v59 = vld [vmem:[#allocation6 + $0x198] sm:$0xff]   ;;  %v1022_v62 = vld [vmem:[#allocation6 + $0x120] sm:$0xff]   ;;  %v1026_v2 = vld [vmem:[#allocation6 + $0x128] sm:$0xff]  }
  0x3c   :  { %907 = vmatprep.subr.bf16.mxu1 %v993_v21  ;;  %v1023_v63 = vld [vmem:[#allocation6 + $0x1a0] sm:$0xff]   ;;  %v1027_v3 = vld [vmem:[#allocation6 + $0x1a8] sm:$0xff]   ;;  %v1028_v4 = vld [vmem:[#allocation6 + $0x170] sm:$0xff]  }
  0x3d   :  { %v1029_v5 = vld [vmem:[#allocation6 + $0x1f0] sm:$0xff]   ;;  %v1032_v8 = vld [vmem:[#allocation6 + $0x178] sm:$0xff]   ;;  %v59_v12 = vld [vmem:[#allocation3 + $0x28] sm:$0xff] }
  0x3e   :  { %886 = vmatpush3.bf16.msra.mxu0 %v994_v22  ;;  %v1030_v6 = vld [vmem:[#allocation6 + $0x130] sm:$0xff]   ;;  %v1033_v9 = vld [vmem:[#allocation6 + $0x1f8] sm:$0xff]   ;;  %v67_v13 = vld [vmem:[#allocation3 + $0x68] sm:$0xff] }
  0x3f   :  { %908 = vmatpush3.bf16.msra.mxu1 %v995_v23  ;;  %887 = vmatprep.subr.bf16.mxu0 %v996_v24  ;;  %v1031_v7 = vld [vmem:[#allocation6 + $0x1b0] sm:$0xff]   ;;  %v1034_v10 = vld [vmem:[#allocation6 + $0x138] sm:$0xff]   ;;  %v75_v16 = vpack.c.bf16 %v67_v13, %v59_v12  ;;  %v58_v18 = vld [vmem:[#allocation3 + $0x20] sm:$0xff] }
  0x40   :  { %909 = vmatprep.subr.bf16.mxu1 %v997_v25  ;;  %v1035_v11 = vld [vmem:[#allocation6 + $0x1b8] sm:$0xff]   ;;  %v66_v19 = vld [vmem:[#allocation3 + $0x60] sm:$0xff]  ;;  %v60_v20 = vld [vmem:[#allocation3 + $0x30] sm:$0xff] }
  0x41   :  { %v61_v14 = vld [vmem:[#allocation3 + $0x38] sm:$0xff]  ;;  %v74_v21 = vpack.c.bf16 %v66_v19, %v58_v18  ;;  %v68_v22 = vld [vmem:[#allocation3 + $0x70] sm:$0xff] }
  0x42   :  { %888 = vmatpush3.bf16.msra.mxu0 %v998_v26  ;;  %v69_v15 = vld [vmem:[#allocation3 + $0x78] sm:$0xff]  ;;  %v76_v23 = vpack.c.bf16 %v68_v22, %v60_v20 }
  0x43   :  { %910 = vmatpush3.bf16.msra.mxu1 %v999_v27  ;;  %889 = vmatprep.subr.bf16.mxu0 %v1000_v28  ;;  %v77_v17 = vpack.c.bf16 %v69_v15, %v61_v14 }
  0x44   :  { %911 = vmatprep.subr.bf16.mxu1 %v1001_v29 }
  0x46   :  { %890 = vmatpush3.bf16.msra.mxu0 %v1002_v30 }
  0x47   :  { %912 = vmatpush3.bf16.msra.mxu1 %v1003_v31  ;;  %919 = vmatprep.subr.bf16.mxu0 %v1004_v44 }
  0x48   :  { %941 = vmatprep.subr.bf16.mxu1 %v1005_v45 }
  0x49   :  { %623 = vmatmul.mubr.bf16.vlgmr.msra.gmra.mrb[0].mxu0 %v70_v40 }
  0x4a   :  { %664 = vmatmul.mubr.bf16.vlgmr.msra.gmra.mrb[0].mxu1 %v72_v43  ;;  %920 = vmatpush3.bf16.msra.mxu0 %v1006_v46 }
  0x4b   :  { %942 = vmatpush3.bf16.msra.mxu1 %v1007_v47  ;;  %921 = vmatprep.subr.bf16.mxu0 %v1008_v48 }
  0x4c   :  { %943 = vmatprep.subr.bf16.mxu1 %v1009_v49  ;;  %704 = vmatprep.mubr.bf16.mxu0 %v75_v16 }
  0x4d   :  { %745 = vmatprep.mubr.bf16.mxu1 %v77_v17 }
  0x4e   :  { %922 = vmatpush3.bf16.msra.mxu0 %v1010_v50 }
  0x4f   :  { %944 = vmatpush3.bf16.msra.mxu1 %v1011_v51  ;;  %923 = vmatprep.subr.bf16.mxu0 %v1012_v52  ;;  %v874_v51 = vld [vmem:[%s1185_s2] ss:$0 sm:$0xff]  ;;  %s1121_s2 = smov [#allocation8]  }
  0x50   :  { %945 = vmatprep.subr.bf16.mxu1 %v1013_v53  ;;  %s797_s12 = sshll.u32 %s1121_s2, 4  ;;  %s798_s12 = int_to_ptr.vmem [resolvable:$true] %s797_s12 }
  0x51   :  { %s1088_s13 = scalar_lea.vmem %s798_s12, 256  ;;  %p1093_p3 = scmp.lt.s32.totalorder %s798_s12, %s798_s12 }
  0x52   :  { %924 = vmatpush3.bf16.msra.mxu0 %v1014_v54  ;;  %p1089_p2 = scmp.ne.s32.totalorder %s798_s12, %s1088_s13  ;;  %p1094_p4 = scmp.lt.s32.totalorder %s1088_s13, %s1088_s13 }
  0x53   :  { %946 = vmatpush3.bf16.msra.mxu1 %v1015_v55  ;;  %925 = vmatprep.subr.bf16.mxu0 %v1016_v56 }
  0x54   :  { %947 = vmatprep.subr.bf16.mxu1 %v1017_v57  ;;  %p1095_p5 = por %p1094_p4, %p1093_p3 }
  0x56   :  { %926 = vmatpush3.bf16.msra.mxu0 %v1018_v58  ;;  %p1096_p6 = pnand %p1095_p5, %p1089_p2 }
  0x57   :  { %948 = vmatpush3.bf16.msra.mxu1 %v1019_v59  ;;  %927 = vmatprep.subr.bf16.mxu0 %v1020_v60 }
  0x58   :  { %949 = vmatprep.subr.bf16.mxu1 %v1021_v61 }
  0x5a   :  { %928 = vmatpush3.bf16.msra.mxu0 %v1022_v62 }
  0x5b   :  { %950 = vmatpush3.bf16.msra.mxu1 %v1023_v63  ;;  %929 = vmatprep.subr.bf16.mxu0 %v1024_v0 }
  0x5c   :  { %951 = vmatprep.subr.bf16.mxu1 %v1025_v1 }
  0x5e   :  { %930 = vmatpush3.bf16.msra.mxu0 %v1026_v2 }
  0x5f   :  { %952 = vmatpush3.bf16.msra.mxu1 %v1027_v3  ;;  %931 = vmatprep.subr.bf16.mxu0 %v1028_v4 }
  0x60   :  { %953 = vmatprep.subr.bf16.mxu1 %v1029_v5 }
  0x62   :  { %932 = vmatpush3.bf16.msra.mxu0 %v1030_v6 }
  0x63   :  { %954 = vmatpush3.bf16.msra.mxu1 %v1031_v7  ;;  %933 = vmatprep.subr.bf16.mxu0 %v1032_v8 }
  0x64   :  { %955 = vmatprep.subr.bf16.mxu1 %v1033_v9 }
  0x66   :  { %934 = vmatpush3.bf16.msra.mxu0 %v1034_v10 }
  0x67   :  { %956 = vmatpush3.bf16.msra.mxu1 %v1035_v11 }
  0x69   :  { %705 = vmatmul.mubr.bf16.vlgmr.msra.gmra.mrb[4].mxu0 %v74_v21 }
  0x6a   :  { %746 = vmatmul.mubr.bf16.vlgmr.msra.gmra.mrb[4].mxu1 %v76_v23 }
 0x11c   :  { %v891_v24 = vpop.f32.mrb[0].mxu0 }
 0x11d   :  { %v913_v25 = vpop.f32.mrb[0].mxu1  ;;  %v892_v26 = vpop.f32.mrb[1].mxu0 }
 0x11e   :  { %v893_v27 = vadd.f32 %v892_v26, %v891_v24  ;;  %v914_v28 = vpop.f32.mrb[1].mxu1  ;;  %v894_v29 = vpop.f32.mrb[2].mxu0 }
 0x11f   :  { %v915_v30 = vadd.f32 %v914_v28, %v913_v25  ;;  %v916_v31 = vpop.f32.mrb[2].mxu1  ;;  %v895_v32 = vpop.f32.mrb[3].mxu0 }
 0x120   :  { %v896_v33 = vadd.f32 %v895_v32, %v894_v29  ;;  %v917_v34 = vpop.f32.mrb[3].mxu1 }
 0x121   :  { %v666_v35 = vadd.f32 %v915_v30, %v893_v27  ;;  %v918_v36 = vadd.f32 %v917_v34, %v916_v31 }
 0x123   :  { %v669_v37 = vadd.f32 %v918_v36, %v896_v33 }
 0x13c   :  { %v935_v38 = vpop.f32.mrb[4].mxu0 }
 0x13d   :  { %v957_v39 = vpop.f32.mrb[4].mxu1  ;;  %v936_v40 = vpop.f32.mrb[5].mxu0 }
 0x13e   :  { %v937_v41 = vadd.f32 %v936_v40, %v935_v38  ;;  %v958_v42 = vpop.f32.mrb[5].mxu1  ;;  %v938_v43 = vpop.f32.mrb[6].mxu0 }
 0x13f   :  { %v959_v44 = vadd.f32 %v958_v42, %v957_v39  ;;  %v960_v45 = vpop.f32.mrb[6].mxu1  ;;  %v939_v46 = vpop.f32.mrb[7].mxu0 }
 0x140   :  { %v707_v47 = vadd.f32 %v937_v41, %v666_v35  ;;  %v940_v48 = vadd.f32 %v939_v46, %v938_v43  ;;  %v961_v49 = vpop.f32.mrb[7].mxu1 }
 0x141   :  { %v962_v50 = vadd.f32 %v961_v49, %v960_v45 }
 0x142   :  { %v748_v52 = vadd.f32 %v959_v44, %v707_v47  ;;  %v710_v53 = vadd.f32 %v940_v48, %v669_v37 }
 0x144   :  { %v751_v54 = vadd.f32 %v962_v50, %v710_v53  ;;  %v770_v55 = vadd.f32 %v874_v51, %v748_v52 }
 0x146   :  { %772 = vmax.xlane.f32.xlu0 %v770_v55  ;;  %v771_v56 = vadd.f32 %v874_v51, %v751_v54 }
 0x14a   :  { %774 = vmax.xlane.f32.xlu0 %v771_v56 }
 0x1d3   :  { %v773_v57 = vpop.xlane.xlu0 %772 }
 0x1d4   :  { %v776_v58 = vsub.f32 %v770_v55, %v773_v57 }
 0x1d6   :  { %v778_v59 = vmul.f32 1.442695, %v776_v58 }
 0x1d7   :  { %v775_v60 = vpop.xlane.xlu0 %774 }
 0x1d8   :  { %1036 = vpow2.f32 %v778_v59  ;;  %v777_v61 = vsub.f32 %v771_v56, %v775_v60 }
 0x1da   :  { %v780_v62 = vmul.f32 1.442695, %v777_v61 }
 0x1dc   :  { %1038 = vpow2.f32 %v780_v62 }
 0x1e2   :  { %v1037_v63 = vpop.eup %1036 }
 0x1e3   :  { %782 = vadd.xlane.f32.xlu1 %v1037_v63 }
 0x1e6   :  { %v1039_v0 = vpop.eup %1038 }
 0x1e7   :  { %784 = vadd.xlane.f32.xlu1 %v1039_v0 }
 0x270   :  { %v783_v1 = vpop.xlane.xlu1 %782 }
 0x271   :  { %1040 = vrcp.f32 %v783_v1 }
 0x274   :  { %v785_v2 = vpop.xlane.xlu1 %784 }
 0x275   :  { %1042 = vrcp.f32 %v785_v2 }
 0x27b   :  { %v1041_v3 = vpop.eup %1040 }
 0x27c   :  { %v787_v4 = vmul.f32 %v1041_v3, %v1037_v63 }
 0x27e   :  { %790 = vst [vmem:[#allocation8] sm:$0xff] %v787_v4 }
 0x27f   :  { %v1043_v5 = vpop.eup %1042 }
 0x280   :  { %v789_v6 = vmul.f32 %v1043_v5, %v1039_v0 }
 0x282   :  { %791 = vst [vmem:[#allocation8 + $0x8] sm:$0xff] %v789_v6 }
 0x283   :  { %1099 = shalt.err (!%p1096_p6)
}
 0x284   :  { %s1100_s16 = scalar_lea.hbm %s1186_s3, 256 }
 0x285   :  { %p1101_p7 = scmp.ne.s32.totalorder %s1186_s3, %s1100_s16  ;;  %p1104_p8 = scmp.lt.u32.totalorder %s1100_s16, %s1186_s3 }
 0x287   :  { %p1106_p9 = pnand %p1104_p8, %p1101_p7 }
 0x289   :  { %1109 = shalt.err (!%p1106_p9)
}
 0x28a   :  { %s1122_s21 = smov 128   ;;  %s1123_s22 = smov 8  }
 0x28b   :  { %803 = dma.vmem_to_hbm [thread:$0]  %s798_s12, 256, %s1186_s3, [#allocation5], %s1122_s21, %s1122_s21, %s1123_s22  }
 0x28c   :  { %1114 = dma.done.wait [#allocation5], 256  }
 0x28d   :  { %1115 = vsyncadd [#allocation5], 4294967040 }
 0x28e   :  { %807 = vsyncpa [#allocation4], 1 }
 0x28f   :  { %808 = vsyncpa [#allocation7], 1 }
 0x290   :  { %809 = vsyncpa [#allocation5], 1 }

</bundles_post_ra>
